<compile_context>
chip_gen: v7x
topology: tpu7x:2x2x1
jax: 0.10.0
libtpu: 0.0.40
codegen_flags: <defaults>
</compile_context>

<pallas_src>
import jax
import jax.numpy as jnp
from jax.experimental import pallas as pl
from jax.experimental.pallas import tpu as pltpu


def wcompute_kernel(xi_ref, xjt_ref, w1_ref, b1_ref, w2_ref, o_ref):
    tb, ti, f = xi_ref.shape           # batch-tile, i-tile rows, features
    n = xjt_ref.shape[2]               # all j columns (lane axis)
    c = w1_ref.shape[0]                # conv1 output channels
    btm = tb * ti

    xi = xi_ref[...]                   # (TB, TI, F)  compute dtype (bf16)
    xjt = xjt_ref[...]                 # (TB, F, N)   compute dtype (bf16)

    # Pairwise abs-difference slab with N on lanes, F on sublanes.
    diff = jnp.abs(xi[:, :, :, None] - xjt[:, None, :, :])        # (TB,TI,F,N)
    diff = diff.reshape(btm, f, n)                                 # leading-dim merge (free)

    # conv2d_1 (1x1) + eval-mode BatchNorm (folded): batched (C,F)@(F,N)
    # matmuls on the MXU, f32 accumulation.  Output stays lane-major in N.
    w1b = jnp.broadcast_to(w1_ref[...][None], (btm, c, f))
    h = jax.lax.dot_general(
        w1b, diff,
        dimension_numbers=(((2,), (1,)), ((0,), (0,))),
        preferred_element_type=jnp.float32)                        # (BTM, C, N)

    # Folded bias / BN shift: per-sublane scalar broadcast along lanes.
    h = h + b1_ref[...][None]
    # F.leaky_relu (slope 0.01) as max(h, 0.01*h).
    h = jnp.maximum(h, 0.01 * h)

    # conv2d_last (1x1, num_operators=1): per-sublane scale then a short
    # sublane reduce over C.  Its bias cancels under the row softmax.
    s = jnp.sum(h * w2_ref[...][None], axis=1)                     # (BTM, N)
    s = s.reshape(tb, ti, n)

    # Diagonal mask generated in-kernel (W_id == identity in fsl-gnn).
    i0 = pl.program_id(1) * ti
    row = jax.lax.broadcasted_iota(jnp.int32, (tb, ti, n), 1) + i0
    col = jax.lax.broadcasted_iota(jnp.int32, (tb, ti, n), 2)
    s = jnp.where(row == col, s - 1e8, s)

    # Row softmax over j (lane axis).  Exact reciprocal: the divisor is a
    # tiny (TB, TI, 1) column, and exact rows-sum-to-1 is cheap here.
    m = jnp.max(s, axis=-1, keepdims=True)
    e = jnp.exp(s - m)
    inv = pl.reciprocal(jnp.sum(e, axis=-1, keepdims=True), approx=False)
    o_ref[...] = (e * inv).astype(o_ref.dtype)


def _step_bytes(tb, ti, n, f, c, cbytes):
    """Approximate per-grid-step VMEM working set (bytes), incl. double
    buffers on the pipelined blocks."""
    xi = 2 * tb * ti * f * cbytes          # xi block, double-buffered
    xjt = 2 * tb * f * n * cbytes          # xj^T block, double-buffered
    diff = tb * ti * f * n * cbytes        # |xi - xj| slab
    h = tb * ti * c * n * 4                # conv1 output (f32 accumulate)
    soft = 3 * tb * ti * n * 4             # scores / exp / prob (f32)
    out = 2 * tb * ti * n * 4              # output block, double-buffered
    w = 2 * (c * f * cbytes + 2 * c * 4)   # weights (negligible)
    return xi + xjt + diff + h + soft + out + w


def _vmem_budget():
    """Generation-aware VMEM budget (per-step working set) and compiler
    vmem limit.  Falls back to v7x-safe numbers if the query fails."""
    try:
        cap = int(pltpu.get_tpu_info().vmem_capacity_bytes)
    except Exception:
        cap = 64 * 1024 * 1024
    vmem_limit = int(cap * 0.75)
    budget = int(cap * 0.40)
    return budget, vmem_limit


def _pick_tiles(b, n, f, c, budget, cbytes):
    """Pick (batch-tile, i-tile).  Prefer whole-N i-tiles and fold batch to
    amortize per-step overhead; shrink the i-tile (16-row granularity, safe
    for bf16 sublane packing) only when a single batch row does not fit.
    Never falls back to an oversized block: tail tiles are handled by the
    cdiv grid + Pallas block masking."""
    ti = n
    if _step_bytes(1, ti, n, f, c, cbytes) <= budget:
        tb = 1
        while tb < b and _step_bytes(tb + 1, ti, n, f, c, cbytes) <= budget:
            tb += 1
        return tb, ti
    if n <= 16:
        return 1, n
    ti = max(16, (n // 16) * 16)
    while ti > 16 and _step_bytes(1, ti, n, f, c, cbytes) > budget:
        ti -= 16
    return 1, min(ti, n)


def wcompute(x, w_id, conv1_w, conv1_b, gamma, beta, run_mean, run_var,
             conv2_w, conv2_b=None, eps=1e-5, compute_dtype=jnp.bfloat16,
             out_dtype=jnp.float32, concat_w_id=True):
    """operator='J2', activation='softmax' forward of Wcompute."""
    B, N, F = x.shape
    C = conv1_w.shape[0]
    del conv2_b  # constant per-row shift is a no-op under the softmax

    # Host-side folding of eval-mode BatchNorm + conv1 bias into the matmul.
    scale = gamma / jnp.sqrt(run_var + eps)                      # (C,)
    w1 = (conv1_w * scale[:, None]).astype(compute_dtype)        # (C, F)
    b1 = ((conv1_b - run_mean) * scale + beta)                   # (C,)
    b1 = b1.reshape(C, 1).astype(jnp.float32)                    # (C, 1)
    w2 = conv2_w.reshape(C, 1).astype(jnp.float32)               # (C, 1)

    # Compute-dtype input streams; x_j pre-transposed so N rides the lanes.
    x_c = x.astype(compute_dtype)                                # (B, N, F)
    xt_c = jnp.swapaxes(x_c, 1, 2)                               # (B, F, N)

    cbytes = jnp.dtype(compute_dtype).itemsize
    budget, vmem_limit = _vmem_budget()
    tb, ti = _pick_tiles(B, N, F, C, budget, cbytes)
    grid = (pl.cdiv(B, tb), pl.cdiv(N, ti))

    cost = pl.CostEstimate(
        flops=int(2 * B * N * N * F * C + 6 * B * N * N * C + 12 * B * N * N),
        transcendentals=int(B * N * N),
        bytes_accessed=int(2 * B * N * F * cbytes + B * N * N *
                           jnp.dtype(out_dtype).itemsize))

    w_new = pl.pallas_call(
        wcompute_kernel,
        out_shape=jax.ShapeDtypeStruct((B, N, N), out_dtype),
        grid_spec=pltpu.PrefetchScalarGridSpec(
            num_scalar_prefetch=0,
            grid=grid,
            in_specs=[
                pl.BlockSpec((tb, ti, F), lambda b, i: (b, i, 0)),   # x_i rows
                pl.BlockSpec((tb, F, N), lambda b, i: (b, 0, 0)),    # x_j^T (all j)
                pl.BlockSpec((C, F), lambda b, i: (0, 0)),           # folded conv1 w
                pl.BlockSpec((C, 1), lambda b, i: (0, 0)),           # folded conv1 b / BN
                pl.BlockSpec((C, 1), lambda b, i: (0, 0)),           # conv2 w column
            ],
            out_specs=pl.BlockSpec((tb, ti, N), lambda b, i: (b, i, 0)),
        ),
        compiler_params=pltpu.CompilerParams(
            dimension_semantics=("parallel", "parallel"),
            vmem_limit_bytes=vmem_limit),
        cost_estimate=cost,
    )(x_c, xt_c, w1, b1, w2)

    if not concat_w_id:
        # Preferred fast path: downstream consumes (W_id, W_new) separately
        # and skips the extra full-HBM concatenate pass.
        return w_id, w_new

    # operator == 'J2': concatenate [W_id, W_new] along the last axis to
    # preserve the original module contract.
    return jnp.concatenate(
        [w_id, w_new.astype(w_id.dtype)[..., None]], axis=3)


def reference(x, w_id, conv1_w, conv1_b, gamma, beta, mean, var,
              conv2_w, conv2_b, eps=1e-5):
    # Pure-JAX re-implementation of the PyTorch forward (eval-mode BN).
    diff = jnp.abs(x[:, :, None, :] - x[:, None, :, :])          # (B, N, N, F)
    h = jnp.einsum('bijf,cf->bijc', diff, conv1_w) + conv1_b
    h = (h - mean) / jnp.sqrt(var + eps) * gamma + beta
    h = jnp.where(h > 0, h, 0.01 * h)
    s = jnp.einsum('bijc,oc->bijo', h, conv2_w)[..., 0] + conv2_b[0]
    s = s - w_id[..., 0] * 1e8
    p = jax.nn.softmax(s, axis=-1)
    return jnp.concatenate([w_id, p[..., None]], axis=3)


if __name__ == "__main__":
    B, N = 2, 8              # batch, number of graph nodes
    F_in = 16                # input_features
    nf = 16
    C = nf * 2               # nf * ratio[0]
    eps = 1e-5

    key = jax.random.PRNGKey(0)
    kx, k1, k2, k3, k4, k5, k6 = jax.random.split(key, 7)

    x = jax.random.normal(kx, (B, N, F_in), dtype=jnp.float32)
    w_id = jnp.broadcast_to(jnp.eye(N, dtype=jnp.float32)[None, :, :, None],
                            (B, N, N, 1))

    # Deterministic parameter init (shapes from Wcompute.__init__).
    conv1_w = 0.1 * jax.random.normal(k1, (C, F_in), dtype=jnp.float32)  # (C,F,1,1) squeezed
    conv1_b = 0.1 * jax.random.normal(k2, (C,), dtype=jnp.float32)
    conv2_w = 0.1 * jax.random.normal(k3, (1, C), dtype=jnp.float32)     # (1,C,1,1) squeezed
    conv2_b = 0.1 * jax.random.normal(k4, (1,), dtype=jnp.float32)
    gamma = 1.0 + 0.05 * jax.random.normal(k5, (C,), dtype=jnp.float32)
    beta = 0.05 * jax.random.normal(k6, (C,), dtype=jnp.float32)
    run_mean = 0.1 * jnp.sin(jnp.arange(C, dtype=jnp.float32))
    run_var = 1.0 + 0.1 * jnp.cos(jnp.arange(C, dtype=jnp.float32)) ** 2

    out = wcompute(x, w_id, conv1_w, conv1_b, gamma, beta,
                   run_mean, run_var, conv2_w, conv2_b, eps)
    out = jax.block_until_ready(out)

    ref = reference(x, w_id, conv1_w, conv1_b, gamma, beta,
                    run_mean, run_var, conv2_w, conv2_b, eps)
    ref = jax.block_until_ready(ref)

    assert out.shape == (B, N, N, 2), out.shape
    # bf16 diff + bf16 MXU operands -> slightly looser tolerance.
    if not jnp.allclose(out, ref, atol=2e-2, rtol=2e-2):
        err = float(jnp.max(jnp.abs(out - ref)))
        raise AssertionError(
            f"Pallas kernel output mismatch vs JAX reference (max |err| = {err})")

    print("KERNEL_OK")
</pallas_src>

<mosaic_0001>
module attributes {stable_mosaic.version = 11 : i64} {
  func.func @wcompute_kernel(%arg0: i32, %arg1: i32, %arg2: memref<2x8x16xbf16, #tpu.memory_space<vmem>>, %arg3: memref<2x16x8xbf16, #tpu.memory_space<vmem>>, %arg4: memref<32x16xbf16, #tpu.memory_space<vmem>>, %arg5: memref<32x1xf32, #tpu.memory_space<vmem>>, %arg6: memref<32x1xf32, #tpu.memory_space<vmem>>, %arg7: memref<2x8x8xf32, #tpu.memory_space<vmem>>) attributes {dimension_semantics = [#tpu.dimension_semantics<parallel>, #tpu.dimension_semantics<parallel>], iteration_bounds = array<i64: 1, 1>, scalar_prefetch = 0 : i64, scratch_operands = 0 : i64, tpu.core_type = #tpu.core_type<tc>, window_params = [{transform_indices = @transform_0, window_bounds = array<i64: 2, 8, 16>}, {transform_indices = @transform_1, window_bounds = array<i64: 2, 16, 8>}, {pipeline_mode = #tpu.pipeline_mode<synchronous>, transform_indices = @transform_2, window_bounds = array<i64: 32, 16>}, {pipeline_mode = #tpu.pipeline_mode<synchronous>, transform_indices = @transform_3, window_bounds = array<i64: 32, 1>}, {pipeline_mode = #tpu.pipeline_mode<synchronous>, transform_indices = @transform_4, window_bounds = array<i64: 32, 1>}, {transform_indices = @transform_5, window_bounds = array<i64: 2, 8, 8>}]} {
    %c0 = arith.constant 0 : index
    %c0_0 = arith.constant 0 : index
    %c0_1 = arith.constant 0 : index
    %0 = vector.load %arg2[%c0, %c0_0, %c0_1] : memref<2x8x16xbf16, #tpu.memory_space<vmem>>, vector<2x8x16xbf16>
    %c0_2 = arith.constant 0 : index
    %c0_3 = arith.constant 0 : index
    %c0_4 = arith.constant 0 : index
    %1 = vector.load %arg3[%c0_2, %c0_3, %c0_4] : memref<2x16x8xbf16, #tpu.memory_space<vmem>>, vector<2x16x8xbf16>
    %2 = vector.shape_cast %0 : vector<2x8x16xbf16> to vector<2x8x16x1xbf16>
    %3 = vector.shape_cast %1 : vector<2x16x8xbf16> to vector<2x1x16x8xbf16>
    %4 = vector.broadcast %2 : vector<2x8x16x1xbf16> to vector<2x8x16x8xbf16>
    %5 = vector.broadcast %3 : vector<2x1x16x8xbf16> to vector<2x8x16x8xbf16>
    %6 = arith.subf %4, %5 : vector<2x8x16x8xbf16>
    %7 = math.absf %6 : vector<2x8x16x8xbf16>
    %8 = vector.shape_cast %7 : vector<2x8x16x8xbf16> to vector<16x16x8xbf16>
    %c0_5 = arith.constant 0 : index
    %c0_6 = arith.constant 0 : index
    %9 = vector.load %arg4[%c0_5, %c0_6] : memref<32x16xbf16, #tpu.memory_space<vmem>>, vector<32x16xbf16>
    %10 = vector.shape_cast %9 : vector<32x16xbf16> to vector<1x32x16xbf16>
    %11 = vector.shape_cast %10 : vector<1x32x16xbf16> to vector<1x32x16xbf16>
    %12 = vector.broadcast %11 : vector<1x32x16xbf16> to vector<16x32x16xbf16>
    %cst = arith.constant dense<0.000000e+00> : vector<16x32x8xf32>
    %13 = tpu.matmul %12, %8, %cst {dimension_numbers = #tpu.dot_dimension_numbers<[2], [1], [1], [2], [0, 0, 0, 1, 1, 2], [0], [0]>} : vector<16x32x16xbf16>, vector<16x16x8xbf16>, vector<16x32x8xf32> -> vector<16x32x8xf32>
    %c0_7 = arith.constant 0 : index
    %c0_8 = arith.constant 0 : index
    %14 = vector.load %arg5[%c0_7, %c0_8] : memref<32x1xf32, #tpu.memory_space<vmem>>, vector<32x1xf32>
    %15 = vector.shape_cast %14 : vector<32x1xf32> to vector<1x32x1xf32>
    %16 = vector.broadcast %15 : vector<1x32x1xf32> to vector<16x32x8xf32>
    %17 = arith.addf %13, %16 : vector<16x32x8xf32>
    %cst_9 = arith.constant 0.00999999977 : f32
    %18 = vector.broadcast %cst_9 : f32 to vector<16x32x8xf32>
    %19 = arith.mulf %18, %17 : vector<16x32x8xf32>
    %20 = arith.maximumf %17, %19 : vector<16x32x8xf32>
    %c0_10 = arith.constant 0 : index
    %c0_11 = arith.constant 0 : index
    %21 = vector.load %arg6[%c0_10, %c0_11] : memref<32x1xf32, #tpu.memory_space<vmem>>, vector<32x1xf32>
    %22 = vector.shape_cast %21 : vector<32x1xf32> to vector<1x32x1xf32>
    %23 = vector.broadcast %22 : vector<1x32x1xf32> to vector<16x32x8xf32>
    %24 = arith.mulf %20, %23 : vector<16x32x8xf32>
    %cst_12 = arith.constant dense<0.000000e+00> : vector<16x8xf32>
    %25 = vector.multi_reduction <add>, %24, %cst_12 [1] : vector<16x32x8xf32> to vector<16x8xf32>
    %26 = vector.shape_cast %25 : vector<16x8xf32> to vector<2x8x8xf32>
    %c8_i32 = arith.constant 8 : i32
    %27 = arith.muli %arg1, %c8_i32 : i32
    %28 = tpu.iota {dimensions = array<i32: 1>} : vector<2x8x8xi32>
    %29 = vector.broadcast %27 : i32 to vector<2x8x8xi32>
    %30 = arith.addi %28, %29 : vector<2x8x8xi32>
    %31 = tpu.iota {dimensions = array<i32: 2>} : vector<2x8x8xi32>
    %32 = arith.cmpi eq, %30, %31 : vector<2x8x8xi32>
    %cst_13 = arith.constant 1.000000e+08 : f32
    %33 = vector.broadcast %cst_13 : f32 to vector<2x8x8xf32>
    %34 = arith.subf %26, %33 : vector<2x8x8xf32>
    %35 = arith.select %32, %34, %26 : vector<2x8x8xi1>, vector<2x8x8xf32>
    %cst_14 = arith.constant dense<0xFF800000> : vector<2x8xf32>
    %36 = vector.multi_reduction <maximumf>, %35, %cst_14 [2] : vector<2x8x8xf32> to vector<2x8xf32>
    %37 = vector.shape_cast %36 : vector<2x8xf32> to vector<2x8x1xf32>
    %38 = vector.broadcast %37 : vector<2x8x1xf32> to vector<2x8x8xf32>
    %39 = arith.subf %35, %38 : vector<2x8x8xf32>
    %40 = math.exp %39 : vector<2x8x8xf32>
    %cst_15 = arith.constant dense<0.000000e+00> : vector<2x8xf32>
    %41 = vector.multi_reduction <add>, %40, %cst_15 [2] : vector<2x8x8xf32> to vector<2x8xf32>
    %42 = vector.shape_cast %41 : vector<2x8xf32> to vector<2x8x1xf32>
    %43 = tpu.reciprocal %42 : vector<2x8x1xf32> -> vector<2x8x1xf32>
    %44 = vector.broadcast %43 : vector<2x8x1xf32> to vector<2x8x8xf32>
    %45 = arith.mulf %40, %44 : vector<2x8x8xf32>
    %c0_16 = arith.constant 0 : index
    %c0_17 = arith.constant 0 : index
    %c0_18 = arith.constant 0 : index
    %46 = vector.load %arg7[%c0_16, %c0_17, %c0_18] : memref<2x8x8xf32, #tpu.memory_space<vmem>>, vector<2x8x8xf32>
    tpu.vector_store %arg7[%c0_16, %c0_17, %c0_18], %45 {strides = array<i32>} : memref<2x8x8xf32, #tpu.memory_space<vmem>>, vector<2x8x8xf32>,
    return
  }
  func.func @transform_0(%arg0: i32, %arg1: i32) -> (i32, i32, i32) {
    %c0_i32 = arith.constant 0 : i32
    %c0_i32_0 = arith.constant 0 : i32
    return %arg0, %arg1, %c0_i32 : i32, i32, i32
  }
  func.func @transform_1(%arg0: i32, %arg1: i32) -> (i32, i32, i32) {
    %c0_i32 = arith.constant 0 : i32
    %c0_i32_0 = arith.constant 0 : i32
    %c0_i32_1 = arith.constant 0 : i32
    return %arg0, %c0_i32, %c0_i32_0 : i32, i32, i32
  }
  func.func @transform_2(%arg0: i32, %arg1: i32) -> (i32, i32) {
    %c0_i32 = arith.constant 0 : i32
    %c0_i32_0 = arith.constant 0 : i32
    %c0_i32_1 = arith.constant 0 : i32
    return %c0_i32, %c0_i32_0 : i32, i32
  }
  func.func @transform_3(%arg0: i32, %arg1: i32) -> (i32, i32) {
    %c0_i32 = arith.constant 0 : i32
    %c0_i32_0 = arith.constant 0 : i32
    %c0_i32_1 = arith.constant 0 : i32
    return %c0_i32, %c0_i32_0 : i32, i32
  }
  func.func @transform_4(%arg0: i32, %arg1: i32) -> (i32, i32) {
    %c0_i32 = arith.constant 0 : i32
    %c0_i32_0 = arith.constant 0 : i32
    %c0_i32_1 = arith.constant 0 : i32
    return %c0_i32, %c0_i32_0 : i32, i32
  }
  func.func @transform_5(%arg0: i32, %arg1: i32) -> (i32, i32, i32) {
    %c0_i32 = arith.constant 0 : i32
    %c0_i32_0 = arith.constant 0 : i32
    return %arg0, %arg1, %c0_i32 : i32, i32, i32
  }
}

</mosaic_0001>

<bundles_post_ra>
// kernel: tpu_custom_call.1
= control target key start
LH: loop header
LB: loop body
LE: loop exit
PB: predicated region body
PF: predicated region fallthrough
CT: control target
= control target key end

     0   :  { %v31_v1 = vlaneseq  ;;  %vm234_vm0 = vcmask 130048   ;;  %s2434_s0 = inlined_call_operand.vmem [shape: bf16[2,8,16], index: 0, kind: input, shape index: {}]   ;;  %s2435_s1 = inlined_call_operand.vmem [shape: bf16[2,16,8], index: 1, kind: input, shape index: {}]   ;;  %s2436_s2 = inlined_call_operand.vmem [shape: bf16[32,16], index: 2, kind: input, shape index: {}]   ;;  %s2437_s3 = inlined_call_operand.vmem [shape: f32[32,1], index: 3, kind: input, shape index: {}]   ;;  %s2438_s4 = inlined_call_operand.vmem [shape: f32[32,1], index: 4, kind: input, shape index: {}]   ;;  %s2439_s5 = inlined_call_operand.hbm [shape: f32[2,8,8], index: 5, kind: output, shape index: {}]  }
   0x1   :  { %v22_v0 = vld [vmem:[%s2434_s0] sm:$0xf] }
   0x2   :  { %v38_v2 = vshrl.u32 %v22_v0, 16  ;;  %v1865_v3 = vld [vmem:[%s2436_s2] sm:$0xff]   ;;  %v29_v4 = vpack.i.b16 %v22_v0, %v22_v0  ;;  %v1868_v5 = vshrl.u32 %v31_v1, 7 }
   0x3   :  { %1689 = vmatprep.mubr.msk.bf16.mxu0 %vm234_vm0, %v1865_v3  ;;  %1695 = vmatprep.mubr.msk.bf16.mxu1 %vm234_vm0, %v1865_v3 }
   0x4   :  { %2444 = vst [vmem:[#allocation5_spill] sm:$0xff] %v1868_v5  ;;  %v33_v6 = vsub.s32 0, %v1868_v5  ;;  %v50_v7 = vsub.s32 1, %v1868_v5  ;;  %v39_v8 = vpack.i.b16 %v38_v2, %v38_v2 }
   0x5   :  { %10 = vsyncpa [#allocation3], 0  ;;  %v64_v13 = vsub.s32 2, %v1868_v5  ;;  %v23_v14 = vld [vmem:[%s2434_s0 + $0x4] sm:$0xf]  ;;  %v78_v17 = vsub.s32 3, %v1868_v5 }
   0x6   :  { %v34_v9 = vrot.slane %v29_v4, %v33_v6  ;;  %v51_v10 = vrot.slane %v29_v4, %v50_v7  ;;  %v44_v11 = vrot.slane %v39_v8, %v33_v6  ;;  %v58_v12 = vrot.slane %v39_v8, %v50_v7  ;;  %v201_v31 = vld [vmem:[%s2437_s3 + $0x8] sm:$0xff]  ;;  %v200_v32 = vld [vmem:[%s2437_s3] sm:$0xff]  ;;  %v202_v34 = vld [vmem:[%s2437_s3 + $0x10] sm:$0xff] }
   0x7   :  { %v65_v15 = vrot.slane %v29_v4, %v64_v13  ;;  %v72_v16 = vrot.slane %v39_v8, %v64_v13  ;;  %v100_v18 = vshrl.u32 %v23_v14, 16  ;;  %v91_v19 = vpack.i.b16 %v23_v14, %v23_v14  ;;  %v203_v35 = vld [vmem:[%s2437_s3 + $0x18] sm:$0xff]  ;;  %v1153_v36 = vld [vmem:[%s2438_s4] sm:$0xff]  ;;  %v1154_v37 = vld [vmem:[%s2438_s4 + $0x8] sm:$0xff] }
   0x8   :  { %36 = vbcast.lane.c.b16.xlu0 %v34_v9, 256  ;;  %53 = vbcast.lane.c.b16.xlu1 %v51_v10, 256  ;;  %v79_v20 = vrot.slane %v29_v4, %v78_v17  ;;  %v86_v21 = vrot.slane %v39_v8, %v78_v17  ;;  %v1825_v33 = vmov 0   ;;  %v1155_v38 = vld [vmem:[%s2438_s4 + $0x10] sm:$0xff]  ;;  %v1156_v39 = vld [vmem:[%s2438_s4 + $0x18] sm:$0xff]  ;;  %v1789_v40 = vld [vmem:[%s2435_s1] sm:$0xff]  }
   0x9   :  { %v101_v22 = vpack.i.b16 %v100_v18, %v100_v18  ;;  %v96_v23 = vrot.slane %v91_v19, %v33_v6  ;;  %v113_v25 = vrot.slane %v91_v19, %v50_v7  ;;  %v127_v27 = vrot.slane %v91_v19, %v64_v13  ;;  %1788 = vset.pattern.permute.xlu1 %v1825_v33  ;;  %v1911_v51 = vld [vmem:[%s2436_s2 + $0x8] sm:$0xff]  }
   0xa   :  { %v141_v29 = vrot.slane %v91_v19, %v78_v17  ;;  %1787 = vset.pattern.permute.xlu0 %v1825_v33  ;;  %v1792_v2 = vld [vmem:[%s2435_s1 + $0x8] sm:$0xff]   ;;  %vm1241_vm1 = vcmask 64512   ;;  %vm1490_vm2 = vcmask 1041409   ;;  %vm1492_vm3 = vcmask 1042434   ;;  %s1826_s1 = smov [#allocation2]  }
   0xb   :  { %v106_v24 = vrot.slane %v101_v22, %v33_v6  ;;  %v120_v26 = vrot.slane %v101_v22, %v50_v7  ;;  %v134_v28 = vrot.slane %v101_v22, %v64_v13  ;;  %v148_v30 = vrot.slane %v101_v22, %v78_v17  ;;  %s1576_s17 = sshll.u32 %s1826_s1, 4  ;;  %s1577_s17 = int_to_ptr.vmem [resolvable:$true] %s1576_s17 }
   0xc   :  { %46 = vbcast.lane.c.b16.xlu0 %v44_v11, 256  ;;  %60 = vbcast.lane.c.b16.xlu1 %v58_v12, 256  ;;  %vm1494_vm4 = vcmask 1043459   ;;  %vm1496_vm5 = vcmask 1044484   ;;  %vm1498_vm6 = vcmask 1045509   ;;  %vm1500_vm7 = vcmask 1046534   ;;  %p1806_p1 = scmp.lt.s32.totalorder %s1577_s17, %s1577_s17 }
   0xd   :  { %vm1502_vm8 = vcmask 1047559   ;;  %s1801_s18 = scalar_lea.vmem %s1577_s17, 256 }
   0xe   :  { %p1802_p0 = scmp.ne.s32.totalorder %s1577_s17, %s1801_s18  ;;  %p1807_p2 = scmp.lt.s32.totalorder %s1801_s18, %s1801_s18 }
  0x10   :  { %67 = vbcast.lane.c.b16.xlu0 %v65_v15, 256  ;;  %74 = vbcast.lane.c.b16.xlu1 %v72_v16, 256  ;;  %p1808_p3 = por %p1807_p2, %p1806_p1 }
  0x12   :  { %p1809_p4 = pnand %p1808_p3, %p1802_p0 }
  0x14   :  { %81 = vbcast.lane.c.b16.xlu0 %v79_v20, 256  ;;  %88 = vbcast.lane.c.b16.xlu1 %v86_v21, 256 }
  0x18   :  { %98 = vbcast.lane.c.b16.xlu0 %v96_v23, 256  ;;  %108 = vbcast.lane.c.b16.xlu1 %v106_v24, 256 }
  0x1c   :  { %115 = vbcast.lane.c.b16.xlu0 %v113_v25, 256  ;;  %122 = vbcast.lane.c.b16.xlu1 %v120_v26, 256 }
  0x20   :  { %129 = vbcast.lane.c.b16.xlu0 %v127_v27, 256  ;;  %136 = vbcast.lane.c.b16.xlu1 %v134_v28, 256 }
  0x24   :  { %143 = vbcast.lane.c.b16.xlu0 %v141_v29, 256  ;;  %150 = vbcast.lane.c.b16.xlu1 %v148_v30, 256 }
  0x28   :  { %211 = vperm.xlu1 %1788, %v201_v31   ;;  %206 = vperm.xlu0 %1787, %v200_v32  }
  0x2c   :  { %216 = vperm.xlu1 %1788, %v202_v34   ;;  %221 = vperm.xlu0 %1787, %v203_v35  }
  0x30   :  { %1159 = vperm.xlu1 %1788, %v1153_v36   ;;  %1164 = vperm.xlu0 %1787, %v1154_v37  }
  0x34   :  { %1169 = vperm.xlu1 %1788, %v1155_v38   ;;  %1174 = vperm.xlu0 %1787, %v1156_v39  }
  0x7a   :  { %v37_v41 = vpop.permute.xlu0 %36  ;;  %v54_v42 = vpop.permute.xlu1 %53 }
  0x7b   :  { %v164_v43 = vsub.bf16 %v37_v41, %v1789_v40  ;;  %v166_v44 = vsub.bf16 %v54_v42, %v1789_v40 }
  0x7d   :  { %v180_v45 = vand.u32 2147450879, %v164_v43  ;;  %v182_v46 = vand.u32 2147450879, %v166_v44 }
  0x7e   :  { %v47_v47 = vpop.permute.xlu0 %46  ;;  %v61_v48 = vpop.permute.xlu1 %60 }
  0x7f   :  { %v165_v49 = vsub.bf16 %v47_v47, %v1789_v40  ;;  %1687 = vmatprep.subr.bf16.mxu0 %v180_v45  ;;  %v167_v50 = vsub.bf16 %v61_v48, %v1789_v40 }
  0x80   :  { %1688 = vmatpush3.bf16.msra.mxu0 %v180_v45 }
  0x81   :  { %v181_v52 = vand.u32 2147450879, %v165_v49  ;;  %v183_v53 = vand.u32 2147450879, %v167_v50  ;;  %1699 = vmatprep.subr.bf16.mxu0 %v182_v46 }
  0x82   :  { %v68_v54 = vpop.permute.xlu0 %67  ;;  %v75_v55 = vpop.permute.xlu1 %74 }
  0x83   :  { %1690 = vmatmul.mubr.msk.bf16.vlgmr.msra.gmra.mrb[0].mxu0 %vm234_vm0, %v1911_v51  ;;  %1693 = vmatprep.subr.bf16.mxu1 %v181_v52  ;;  %v168_v56 = vsub.bf16 %v68_v54, %v1789_v40  ;;  %v169_v57 = vsub.bf16 %v75_v55, %v1789_v40 }
  0x84   :  { %1694 = vmatpush3.bf16.msra.mxu1 %v181_v52  ;;  %1700 = vmatpush3.bf16.msra.mxu0 %v182_v46 }
  0x85   :  { %1705 = vmatprep.subr.bf16.mxu1 %v183_v53  ;;  %v184_v58 = vand.u32 2147450879, %v168_v56  ;;  %v185_v59 = vand.u32 2147450879, %v169_v57  ;;  %1701 = vmatprep.mubr.msk.bf16.mxu0 %vm234_vm0, %v1865_v3  ;;  %v1999_v56 = vand.u32 127, %v31_v1 }
  0x86   :  { %v82_v60 = vpop.permute.xlu0 %81  ;;  %v89_v61 = vpop.permute.xlu1 %88 }
  0x87   :  { %1696 = vmatmul.mubr.msk.bf16.vlgmr.msra.gmra.mrb[0].mxu1 %vm234_vm0, %v1911_v51  ;;  %1711 = vmatprep.subr.bf16.mxu0 %v184_v58  ;;  %v170_v62 = vsub.bf16 %v82_v60, %v1789_v40  ;;  %v171_v0 = vsub.bf16 %v89_v61, %v1789_v40  ;;  %2445 = vst [vmem:[#allocation6_spill] sm:$0xff] %v1999_v56 }
  0x88   :  { %1706 = vmatpush3.bf16.msra.mxu1 %v183_v53  ;;  %1707 = vmatprep.mubr.msk.bf16.mxu1 %vm234_vm0, %v1865_v3 }
  0x89   :  { %1717 = vmatprep.subr.bf16.mxu1 %v185_v59  ;;  %v186_v63 = vand.u32 2147450879, %v170_v62  ;;  %v187_v6 = vand.u32 2147450879, %v171_v0 }
  0x8a   :  { %v99_v4 = vpop.permute.xlu0 %98  ;;  %v109_v8 = vpop.permute.xlu1 %108 }
  0x8b   :  { %1702 = vmatmul.mubr.msk.bf16.vlgmr.msra.gmra.mrb[4].mxu0 %vm234_vm0, %v1911_v51  ;;  %v172_v7 = vsub.bf16 %v99_v4, %v1792_v2  ;;  %v173_v10 = vsub.bf16 %v109_v8, %v1792_v2 }
  0x8c   :  { %1712 = vmatpush3.bf16.msra.mxu0 %v184_v58  ;;  %1713 = vmatprep.mubr.msk.bf16.mxu0 %vm234_vm0, %v1865_v3 }
  0x8d   :  { %1723 = vmatprep.subr.bf16.mxu0 %v186_v63  ;;  %v188_v9 = vand.u32 2147450879, %v172_v7  ;;  %v189_v12 = vand.u32 2147450879, %v173_v10 }
  0x8e   :  { %v116_v11 = vpop.permute.xlu0 %115  ;;  %v123_v14 = vpop.permute.xlu1 %122 }
  0x8f   :  { %1708 = vmatmul.mubr.msk.bf16.vlgmr.msra.gmra.mrb[4].mxu1 %vm234_vm0, %v1911_v51  ;;  %v174_v13 = vsub.bf16 %v116_v11, %v1792_v2  ;;  %v175_v16 = vsub.bf16 %v123_v14, %v1792_v2 }
  0x90   :  { %1718 = vmatpush3.bf16.msra.mxu1 %v185_v59  ;;  %1719 = vmatprep.mubr.msk.bf16.mxu1 %vm234_vm0, %v1865_v3 }
  0x91   :  { %1729 = vmatprep.subr.bf16.mxu1 %v187_v6  ;;  %v190_v15 = vand.u32 2147450879, %v174_v13  ;;  %v191_v18 = vand.u32 2147450879, %v175_v16 }
  0x92   :  { %v130_v17 = vpop.permute.xlu0 %129  ;;  %v137_v20 = vpop.permute.xlu1 %136 }
  0x93   :  { %1714 = vmatmul.mubr.msk.bf16.vlgmr.msra.gmra.mrb[8].mxu0 %vm234_vm0, %v1911_v51  ;;  %v176_v19 = vsub.bf16 %v130_v17, %v1792_v2  ;;  %v177_v22 = vsub.bf16 %v137_v20, %v1792_v2 }
  0x94   :  { %1724 = vmatpush3.bf16.msra.mxu0 %v186_v63  ;;  %1725 = vmatprep.mubr.msk.bf16.mxu0 %vm234_vm0, %v1865_v3 }
  0x95   :  { %1735 = vmatprep.subr.bf16.mxu0 %v188_v9  ;;  %v192_v21 = vand.u32 2147450879, %v176_v19  ;;  %v193_v24 = vand.u32 2147450879, %v177_v22 }
  0x96   :  { %v144_v23 = vpop.permute.xlu0 %143  ;;  %v151_v26 = vpop.permute.xlu1 %150 }
  0x97   :  { %1720 = vmatmul.mubr.msk.bf16.vlgmr.msra.gmra.mrb[8].mxu1 %vm234_vm0, %v1911_v51  ;;  %v178_v25 = vsub.bf16 %v144_v23, %v1792_v2  ;;  %v179_v28 = vsub.bf16 %v151_v26, %v1792_v2 }
  0x98   :  { %1730 = vmatpush3.bf16.msra.mxu1 %v187_v6  ;;  %1731 = vmatprep.mubr.msk.bf16.mxu1 %vm234_vm0, %v1865_v3 }
  0x99   :  { %1741 = vmatprep.subr.bf16.mxu1 %v189_v12  ;;  %v194_v27 = vand.u32 2147450879, %v178_v25  ;;  %v195_v29 = vand.u32 2147450879, %v179_v28 }
  0x9b   :  { %1726 = vmatmul.mubr.msk.bf16.vlgmr.msra.gmra.mrb[12].mxu0 %vm234_vm0, %v1911_v51 }
  0x9c   :  { %1736 = vmatpush3.bf16.msra.mxu0 %v188_v9  ;;  %1737 = vmatprep.mubr.msk.bf16.mxu0 %vm234_vm0, %v1865_v3 }
  0x9d   :  { %1747 = vmatprep.subr.bf16.mxu0 %v190_v15 }
  0x9f   :  { %1732 = vmatmul.mubr.msk.bf16.vlgmr.msra.gmra.mrb[12].mxu1 %vm234_vm0, %v1911_v51 }
  0xa0   :  { %1742 = vmatpush3.bf16.msra.mxu1 %v189_v12  ;;  %1743 = vmatprep.mubr.msk.bf16.mxu1 %vm234_vm0, %v1865_v3 }
  0xa1   :  { %1753 = vmatprep.subr.bf16.mxu1 %v191_v18 }
  0xa3   :  { %1738 = vmatmul.mubr.msk.bf16.vlgmr.msra.gmra.mrb[16].mxu0 %vm234_vm0, %v1911_v51 }
  0xa4   :  { %1748 = vmatpush3.bf16.msra.mxu0 %v190_v15  ;;  %1749 = vmatprep.mubr.msk.bf16.mxu0 %vm234_vm0, %v1865_v3 }
  0xa5   :  { %1759 = vmatprep.subr.bf16.mxu0 %v192_v21 }
  0xa7   :  { %1744 = vmatmul.mubr.msk.bf16.vlgmr.msra.gmra.mrb[16].mxu1 %vm234_vm0, %v1911_v51  ;;  %v1976_v30 = vpop.permute.xlu1 %211  ;;  %v1978_v31 = vpop.permute.xlu0 %206 }
  0xa8   :  { %1754 = vmatpush3.bf16.msra.mxu1 %v191_v18  ;;  %1755 = vmatprep.mubr.msk.bf16.mxu1 %vm234_vm0, %v1865_v3 }
  0xa9   :  { %1765 = vmatprep.subr.bf16.mxu1 %v193_v24 }
  0xab   :  { %1750 = vmatmul.mubr.msk.bf16.vlgmr.msra.gmra.mrb[20].mxu0 %vm234_vm0, %v1911_v51  ;;  %v1980_v32 = vpop.permute.xlu1 %216  ;;  %v1982_v33 = vpop.permute.xlu0 %221 }
  0xac   :  { %1760 = vmatpush3.bf16.msra.mxu0 %v192_v21  ;;  %1761 = vmatprep.mubr.msk.bf16.mxu0 %vm234_vm0, %v1865_v3 }
  0xad   :  { %1771 = vmatprep.subr.bf16.mxu0 %v194_v27 }
  0xaf   :  { %1756 = vmatmul.mubr.msk.bf16.vlgmr.msra.gmra.mrb[20].mxu1 %vm234_vm0, %v1911_v51  ;;  %v1984_v34 = vpop.permute.xlu1 %1159  ;;  %v1986_v36 = vpop.permute.xlu0 %1164 }
  0xb0   :  { %1766 = vmatpush3.bf16.msra.mxu1 %v193_v24  ;;  %1767 = vmatprep.mubr.msk.bf16.mxu1 %vm234_vm0, %v1865_v3 }
  0xb1   :  { %1777 = vmatprep.subr.bf16.mxu1 %v195_v29 }
  0xb3   :  { %1762 = vmatmul.mubr.msk.bf16.vlgmr.msra.gmra.mrb[24].mxu0 %vm234_vm0, %v1911_v51  ;;  %v1992_v46 = vpop.permute.xlu1 %1169  ;;  %v1996_v55 = vpop.permute.xlu0 %1174 }
  0xb4   :  { %1772 = vmatpush3.bf16.msra.mxu0 %v194_v27  ;;  %1773 = vmatprep.mubr.msk.bf16.mxu0 %vm234_vm0, %v1865_v3 }
  0xb7   :  { %1768 = vmatmul.mubr.msk.bf16.vlgmr.msra.gmra.mrb[24].mxu1 %vm234_vm0, %v1911_v51 }
  0xb8   :  { %1778 = vmatpush3.bf16.msra.mxu1 %v195_v29  ;;  %1779 = vmatprep.mubr.msk.bf16.mxu1 %vm234_vm0, %v1865_v3 }
  0xbb   :  { %1774 = vmatmul.mubr.msk.bf16.vlgmr.msra.gmra.mrb[28].mxu0 %vm234_vm0, %v1911_v51 }
  0xbf   :  { %1780 = vmatmul.mubr.msk.bf16.vlgmr.msra.gmra.mrb[28].mxu1 %vm234_vm0, %v1911_v51 }
 0x156   :  { %v1691_v35 = vpop.f32.mrb[0].mxu0 }
 0x157   :  { %v284_v3 = vadd.f32 %v1691_v35, %v1980_v32  ;;  %v275_v37 = vpop.f32.mrb[1].mxu0 }
 0x158   :  { %v276_v38 = vadd.f32 %v275_v37, %v1978_v31  ;;  %v1692_v39 = vpop.f32.mrb[2].mxu0 }
 0x159   :  { %v1027_v40 = vmul.f32 0.01, %v284_v3  ;;  %v287_v41 = vadd.f32 %v1692_v39, %v1982_v33  ;;  %v278_v42 = vpop.f32.mrb[3].mxu0 }
 0x15a   :  { %v1025_v43 = vmul.f32 0.01, %v276_v38  ;;  %v279_v44 = vadd.f32 %v278_v42, %v1976_v30  ;;  %v1697_v45 = vpop.f32.mrb[0].mxu1 }
 0x15b   :  { %v1091_v47 = vmax.f32 %v284_v3, %v1027_v40  ;;  %v1028_v48 = vmul.f32 0.01, %v287_v41  ;;  %v333_v49 = vadd.f32 %v1697_v45, %v1980_v32  ;;  %v324_v50 = vpop.f32.mrb[1].mxu1 }
 0x15c   :  { %v1089_v51 = vmax.f32 %v276_v38, %v1025_v43  ;;  %v1026_v52 = vmul.f32 0.01, %v279_v44  ;;  %v325_v53 = vadd.f32 %v324_v50, %v1978_v31  ;;  %v1698_v54 = vpop.f32.mrb[2].mxu1 }
 0x15d   :  { %v1092_v57 = vmax.f32 %v287_v41, %v1028_v48  ;;  %v1031_v58 = vmul.f32 0.01, %v333_v49  ;;  %v336_v59 = vadd.f32 %v1698_v54, %v1982_v33  ;;  %v327_v60 = vpop.f32.mrb[3].mxu1  ;;  %v2003_v61 = vmul.f32 %v1992_v46, %v1091_v47 }
 0x15e   :  { %v1090_v62 = vmax.f32 %v279_v44, %v1026_v52  ;;  %v1029_v63 = vmul.f32 0.01, %v325_v53  ;;  %v328_v0 = vadd.f32 %v327_v60, %v1976_v30  ;;  %v1703_v2 = vpop.f32.mrb[4].mxu0  ;;  %v2007_v4 = vmul.f32 %v1984_v34, %v1089_v51 }
 0x15f   :  { %v1095_v6 = vmax.f32 %v333_v49, %v1031_v58  ;;  %v1032_v7 = vmul.f32 0.01, %v336_v59  ;;  %v382_v1 = vadd.f32 %v1703_v2, %v1980_v32  ;;  %v373_v8 = vpop.f32.mrb[5].mxu0  ;;  %v2011_v9 = vmul.f32 %v1996_v55, %v1092_v57 }
 0x160   :  { %v1093_v10 = vmax.f32 %v325_v53, %v1029_v63  ;;  %v1030_v11 = vmul.f32 0.01, %v328_v0  ;;  %v374_v12 = vadd.f32 %v373_v8, %v1978_v31  ;;  %v1704_v13 = vpop.f32.mrb[6].mxu0  ;;  %v2015_v14 = vmul.f32 %v1986_v36, %v1090_v62 }
 0x161   :  { %v1096_v15 = vmax.f32 %v336_v59, %v1032_v7  ;;  %v1035_v16 = vmul.f32 0.01, %v382_v1  ;;  %v385_v17 = vadd.f32 %v1704_v13, %v1982_v33  ;;  %v376_v18 = vpop.f32.mrb[7].mxu0  ;;  %v2019_v19 = vmul.f32 %v1992_v46, %v1095_v6 }
 0x162   :  { %v1181_v20 = vmul.f32 %v1984_v34, %v1093_v10  ;;  %v1094_v21 = vmax.f32 %v328_v0, %v1030_v11  ;;  %v1033_v22 = vmul.f32 0.01, %v374_v12  ;;  %v377_v23 = vadd.f32 %v376_v18, %v1976_v30  ;;  %v1709_v24 = vpop.f32.mrb[4].mxu1 }
 0x163   :  { %v1099_v25 = vmax.f32 %v382_v1, %v1035_v16  ;;  %v1036_v26 = vmul.f32 0.01, %v385_v17  ;;  %v431_v27 = vadd.f32 %v1709_v24, %v1980_v32  ;;  %v422_v28 = vpop.f32.mrb[5].mxu1  ;;  %v2025_v29 = vmul.f32 %v1996_v55, %v1096_v15 }
 0x164   :  { %v1255_v35 = vsel %vm1241_vm1, %v1181_v20, 0.0  ;;  %v1182_v3 = vmul.f32 %v1986_v36, %v1094_v21  ;;  %v1097_v37 = vmax.f32 %v374_v12, %v1033_v22  ;;  %v1034_v38 = vmul.f32 0.01, %v377_v23  ;;  %v1710_v39 = vpop.f32.mrb[6].mxu1 }
 0x165   :  { %v1187_v40 = vmul.f32 %v1992_v46, %v1099_v25  ;;  %v1100_v41 = vmax.f32 %v385_v17, %v1036_v26  ;;  %v1039_v42 = vmul.f32 0.01, %v431_v27  ;;  %v423_v43 = vadd.f32 %v422_v28, %v1978_v31  ;;  %v425_v44 = vpop.f32.mrb[7].mxu1 }
 0x166   :  { %v1256_v45 = vsel %vm1241_vm1, %v1182_v3, 0.0  ;;  %v1185_v47 = vmul.f32 %v1984_v34, %v1097_v37  ;;  %v1098_v48 = vmax.f32 %v377_v23, %v1034_v38  ;;  %v434_v49 = vadd.f32 %v1710_v39, %v1982_v33  ;;  %v1715_v50 = vpop.f32.mrb[8].mxu0 }
 0x167   :  { %v2034_v51 = vadd.f32 %v1256_v45, %v1255_v35  ;;  %v1271_v52 = vsel %vm1241_vm1, %v1187_v40, 0.0  ;;  %v1188_v53 = vmul.f32 %v1996_v55, %v1100_v41  ;;  %v1103_v54 = vmax.f32 %v431_v27, %v1039_v42  ;;  %v471_v57 = vpop.f32.mrb[9].mxu0 }
 0x168   :  { %v1268_v58 = vsel %vm1241_vm1, %v1185_v47, 0.0  ;;  %v1186_v59 = vmul.f32 %v1986_v36, %v1098_v48  ;;  %v1037_v60 = vmul.f32 0.01, %v423_v43  ;;  %v1040_v62 = vmul.f32 0.01, %v434_v49  ;;  %v1716_v63 = vpop.f32.mrb[10].mxu0 }
 0x169   :  { %v1273_v0 = vsel %vm1241_vm1, %v1188_v53, 0.0  ;;  %v1191_v2 = vmul.f32 %v1992_v46, %v1103_v54  ;;  %v426_v6 = vadd.f32 %v425_v44, %v1976_v30  ;;  %v480_v7 = vadd.f32 %v1715_v50, %v1980_v32  ;;  %v474_v1 = vpop.f32.mrb[11].mxu0 }
 0x16a   :  { %v1269_v8 = vsel %vm1241_vm1, %v1186_v59, 0.0  ;;  %v1101_v10 = vmax.f32 %v423_v43, %v1037_v60  ;;  %v1104_v11 = vmax.f32 %v434_v49, %v1040_v62  ;;  %v472_v12 = vadd.f32 %v471_v57, %v1978_v31  ;;  %v1721_v13 = vpop.f32.mrb[8].mxu1 }
 0x16b   :  { %v1270_v15 = vadd.f32 %v1269_v8, %v1268_v58  ;;  %v1284_v16 = vsel %vm1241_vm1, %v1191_v2, 0.0  ;;  %v1038_v17 = vmul.f32 0.01, %v426_v6  ;;  %v1043_v18 = vmul.f32 0.01, %v480_v7  ;;  %v520_v20 = vpop.f32.mrb[9].mxu1 }
 0x16c   :  { %v1189_v21 = vmul.f32 %v1984_v34, %v1101_v10  ;;  %v1192_v22 = vmul.f32 %v1996_v55, %v1104_v11  ;;  %v1041_v23 = vmul.f32 0.01, %v472_v12  ;;  %v483_v24 = vadd.f32 %v1716_v63, %v1982_v33  ;;  %v1722_v25 = vpop.f32.mrb[10].mxu1 }
 0x16d   :  { %v1272_v26 = vadd.f32 %v1271_v52, %v1270_v15  ;;  %v1102_v27 = vmax.f32 %v426_v6, %v1038_v17  ;;  %v1107_v28 = vmax.f32 %v480_v7, %v1043_v18  ;;  %v475_v35 = vadd.f32 %v474_v1, %v1976_v30  ;;  %v523_v3 = vpop.f32.mrb[11].mxu1 }
 0x16e   :  { %v1281_v37 = vsel %vm1241_vm1, %v1189_v21, 0.0  ;;  %v1286_v38 = vsel %vm1241_vm1, %v1192_v22, 0.0  ;;  %v1105_v39 = vmax.f32 %v472_v12, %v1041_v23  ;;  %v1044_v40 = vmul.f32 0.01, %v483_v24  ;;  %v1727_v41 = vpop.f32.mrb[12].mxu0 }
 0x16f   :  { %v1274_v42 = vadd.f32 %v1273_v0, %v1272_v26  ;;  %v1190_v43 = vmul.f32 %v1986_v36, %v1102_v27  ;;  %v1195_v44 = vmul.f32 %v1992_v46, %v1107_v28  ;;  %v1042_v45 = vmul.f32 0.01, %v475_v35  ;;  %v569_v47 = vpop.f32.mrb[13].mxu0 }
 0x170   :  { %v1193_v48 = vmul.f32 %v1984_v34, %v1105_v39  ;;  %v1108_v49 = vmax.f32 %v483_v24, %v1044_v40  ;;  %v529_v50 = vadd.f32 %v1721_v13, %v1980_v32  ;;  %v521_v52 = vadd.f32 %v520_v20, %v1978_v31  ;;  %v1728_v53 = vpop.f32.mrb[14].mxu0 }
 0x171   :  { %v1275_v54 = vrot.slane %v1274_v42, 4  ;;  %v1282_v57 = vsel %vm1241_vm1, %v1190_v43, 0.0  ;;  %v1297_v58 = vsel %vm1241_vm1, %v1195_v44, 0.0  ;;  %v1106_v59 = vmax.f32 %v475_v35, %v1042_v45  ;;  %v572_v60 = vpop.f32.mrb[15].mxu0 }
 0x172   :  { %v1283_v62 = vadd.f32 %v1282_v57, %v1281_v37  ;;  %v1294_v63 = vsel %vm1241_vm1, %v1193_v48, 0.0  ;;  %v1196_v0 = vmul.f32 %v1996_v55, %v1108_v49  ;;  %v1047_v2 = vmul.f32 0.01, %v529_v50  ;;  %v1733_v6 = vpop.f32.mrb[12].mxu1 }
 0x173   :  { %v1276_v7 = vadd.f32 %v1275_v54, %v1274_v42  ;;  %v1194_v1 = vmul.f32 %v1986_v36, %v1106_v59  ;;  %v1045_v8 = vmul.f32 0.01, %v521_v52  ;;  %v532_v10 = vadd.f32 %v1722_v25, %v1982_v33  ;;  %v2064_v11 = vpop.f32.mrb[13].mxu1 }
 0x174   :  { %v1285_v12 = vadd.f32 %v1284_v16, %v1283_v62  ;;  %v1299_v13 = vsel %vm1241_vm1, %v1196_v0, 0.0  ;;  %v1111_v15 = vmax.f32 %v529_v50, %v1047_v2  ;;  %v524_v17 = vadd.f32 %v523_v3, %v1976_v30  ;;  %v2068_v18 = vpop.f32.mrb[14].mxu1 }
 0x175   :  { %v1277_v20 = vrot.slane %v1276_v7, 2  ;;  %v1295_v21 = vsel %vm1241_vm1, %v1194_v1, 0.0  ;;  %v1109_v22 = vmax.f32 %v521_v52, %v1045_v8  ;;  %v1048_v23 = vmul.f32 0.01, %v532_v10  ;;  %v2071_v24 = vpop.f32.mrb[15].mxu1 }
 0x176   :  { %v1287_v26 = vadd.f32 %v1286_v38, %v1285_v12  ;;  %v1296_v27 = vadd.f32 %v1295_v21, %v1294_v63  ;;  %v1199_v25 = vmul.f32 %v1992_v46, %v1111_v15  ;;  %v1046_v28 = vmul.f32 0.01, %v524_v17  ;;  %v2074_v16 = vpop.f32.mrb[16].mxu0 }
 0x177   :  { %v1278_v35 = vadd.f32 %v1277_v20, %v1276_v7  ;;  %v1197_v37 = vmul.f32 %v1984_v34, %v1109_v22  ;;  %v1112_v3 = vmax.f32 %v532_v10, %v1048_v23  ;;  %v578_v39 = vadd.f32 %v1727_v41, %v1980_v32  ;;  %v2078_v40 = vpop.f32.mrb[17].mxu0 }
 0x178   :  { %v1288_v42 = vrot.slane %v1287_v26, 4  ;;  %v1298_v43 = vadd.f32 %v1297_v58, %v1296_v27  ;;  %v1310_v44 = vsel %vm1241_vm1, %v1199_v25, 0.0  ;;  %v1110_v45 = vmax.f32 %v524_v17, %v1046_v28  ;;  %v2081_v38 = vpop.f32.mrb[18].mxu0 }
 0x179   :  { %v1279_v48 = vrot.slane %v1278_v35, 1  ;;  %v1307_v49 = vsel %vm1241_vm1, %v1197_v37, 0.0  ;;  %v1200_v50 = vmul.f32 %v1996_v55, %v1112_v3  ;;  %v1051_v52 = vmul.f32 0.01, %v578_v39  ;;  %v2085_v54 = vpop.f32.mrb[19].mxu0 }
 0x17a   :  { %v1289_v57 = vadd.f32 %v1288_v42, %v1287_v26  ;;  %v1300_v59 = vadd.f32 %v1299_v13, %v1298_v43  ;;  %v1198_v41 = vmul.f32 %v1986_v36, %v1110_v45  ;;  %v570_v62 = vadd.f32 %v569_v47, %v1978_v31  ;;  %v2089_v58 = vpop.f32.mrb[16].mxu1 }
 0x17b   :  { %v2091_v63 = vadd.f32 %v1279_v48, %v1278_v35  ;;  %v1312_v0 = vsel %vm1241_vm1, %v1200_v50, 0.0  ;;  %v1115_v2 = vmax.f32 %v578_v39, %v1051_v52  ;;  %v581_v7 = vadd.f32 %v1728_v53, %v1982_v33  ;;  %v2095_v1 = vpop.f32.mrb[17].mxu1 }
 0x17c   :  { %v1290_v8 = vrot.slane %v1289_v57, 2  ;;  %v1301_v10 = vrot.slane %v1300_v59, 4  ;;  %v1308_v12 = vsel %vm1241_vm1, %v1198_v41, 0.0  ;;  %v1049_v13 = vmul.f32 0.01, %v570_v62  ;;  %v2098_v15 = vpop.f32.mrb[18].mxu1 }
 0x17d   :  { %2446 = vst [vmem:[#allocation7_spill] sm:$0xff] %v2091_v63  ;;  %v1309_v17 = vadd.f32 %v1308_v12, %v1307_v49  ;;  %v1203_v47 = vmul.f32 %v1992_v46, %v1115_v2  ;;  %v1052_v20 = vmul.f32 0.01, %v581_v7  ;;  %v573_v21 = vadd.f32 %v572_v60, %v1976_v30  ;;  %v2102_v22 = vpop.f32.mrb[19].mxu1 }
 0x17e   :  { %v2104_v23 = vadd.f32 %v1290_v8, %v1289_v57  ;;  %v1302_v53 = vadd.f32 %v1301_v10, %v1300_v59  ;;  %v1113_v26 = vmax.f32 %v570_v62, %v1049_v13  ;;  %v627_v27 = vadd.f32 %v1733_v6, %v1980_v32  ;;  %v2107_v25 = vpop.f32.mrb[20].mxu0 }
 0x17f   :  { %v1311_v28 = vadd.f32 %v1310_v44, %v1309_v17  ;;  %v1323_v35 = vsel %vm1241_vm1, %v1203_v47, 0.0  ;;  %v1116_v37 = vmax.f32 %v581_v7, %v1052_v20  ;;  %v1050_v3 = vmul.f32 0.01, %v573_v21  ;;  %v2110_v39 = vpop.f32.mrb[21].mxu0 }
 0x180   :  { %v1303_v60 = vrot.slane %v1302_v53, 2  ;;  %v1201_v43 = vmul.f32 %v1984_v34, %v1113_v26  ;;  %v1055_v45 = vmul.f32 0.01, %v627_v27  ;;  %v2114_v48 = vpop.f32.mrb[22].mxu0  ;;  %v619_v44 = vadd.f32 %v2064_v11, %v1978_v31 }
 0x181   :  { %v1313_v49 = vadd.f32 %v1312_v0, %v1311_v28  ;;  %v1204_v6 = vmul.f32 %v1996_v55, %v1116_v37  ;;  %v1114_v50 = vmax.f32 %v573_v21, %v1050_v3  ;;  %v2119_v52 = vpop.f32.mrb[23].mxu0  ;;  %v630_v62 = vadd.f32 %v2068_v18, %v1982_v33 }
 0x182   :  { %v2121_v57 = vadd.f32 %v1303_v60, %v1302_v53  ;;  %v1320_v59 = vsel %vm1241_vm1, %v1201_v43, 0.0  ;;  %v1119_v41 = vmax.f32 %v627_v27, %v1055_v45  ;;  %v2126_v2 = vpop.f32.mrb[20].mxu1  ;;  %v1053_v10 = vmul.f32 0.01, %v619_v44 }
 0x183   :  { %v1314_v7 = vrot.slane %v1313_v49, 4  ;;  %v1325_v0 = vsel %vm1241_vm1, %v1204_v6, 0.0  ;;  %v1202_v8 = vmul.f32 %v1986_v36, %v1114_v50  ;;  %v2130_v12 = vpop.f32.mrb[21].mxu1  ;;  %v1056_v13 = vmul.f32 0.01, %v630_v62 }
 0x184   :  { %v1207_v11 = vmul.f32 %v1992_v46, %v1119_v41  ;;  %v622_v17 = vadd.f32 %v2071_v24, %v1976_v30  ;;  %v676_v47 = vadd.f32 %v2074_v16, %v1980_v32  ;;  %v2137_v18 = vpop.f32.mrb[22].mxu1  ;;  %v1117_v53 = vmax.f32 %v619_v44, %v1053_v10 }
 0x185   :  { %v2139_v20 = vadd.f32 %v1314_v7, %v1313_v49  ;;  %v1321_v21 = vsel %vm1241_vm1, %v1202_v8, 0.0  ;;  %v668_v26 = vadd.f32 %v2078_v40, %v1978_v31  ;;  %v2144_v27 = vpop.f32.mrb[23].mxu1  ;;  %v1120_v3 = vmax.f32 %v630_v62, %v1056_v13 }
 0x186   :  { %v1322_v28 = vadd.f32 %v1321_v21, %v1320_v59  ;;  %v1336_v37 = vsel %vm1241_vm1, %v1207_v11, 0.0  ;;  %v1054_v24 = vmul.f32 0.01, %v622_v17  ;;  %v2147_v60 = vpop.f32.mrb[24].mxu0  ;;  %v1205_v43 = vmul.f32 %v1984_v34, %v1117_v53 }
 0x187   :  { %v1059_v45 = vmul.f32 0.01, %v676_v47  ;;  %v1057_v49 = vmul.f32 0.01, %v668_v26  ;;  %v2151_v6 = vpop.f32.mrb[25].mxu0  ;;  %v1208_v40 = vmul.f32 %v1996_v55, %v1120_v3  ;;  %v679_v59 = vadd.f32 %v2081_v38, %v1982_v33 }
 0x188   :  { %v1324_v50 = vadd.f32 %v1323_v35, %v1322_v28  ;;  %v1118_v44 = vmax.f32 %v622_v17, %v1054_v24  ;;  %v2156_v41 = vpop.f32.mrb[26].mxu0  ;;  %v1333_v62 = vsel %vm1241_vm1, %v1205_v43, 0.0  ;;  %v671_v10 = vadd.f32 %v2085_v54, %v1976_v30 }
 0x189   :  { %v1123_v7 = vmax.f32 %v676_v47, %v1059_v45  ;;  %v1121_v8 = vmax.f32 %v668_v26, %v1057_v49  ;;  %v2161_v11 = vpop.f32.mrb[27].mxu0  ;;  %v1338_v35 = vsel %vm1241_vm1, %v1208_v40, 0.0  ;;  %v1060_v17 = vmul.f32 0.01, %v679_v59 }
 0x18a   :  { %v1326_v13 = vadd.f32 %v1325_v0, %v1324_v50  ;;  %v1206_v21 = vmul.f32 %v1986_v36, %v1118_v44  ;;  %v2165_v53 = vpop.f32.mrb[24].mxu1  ;;  %v1058_v3 = vmul.f32 0.01, %v671_v10  ;;  %v725_v47 = vadd.f32 %v2089_v58, %v1980_v32 }
 0x18b   :  { %v1211_v38 = vmul.f32 %v1992_v46, %v1123_v7  ;;  %v1209_v28 = vmul.f32 %v1984_v34, %v1121_v8  ;;  %v2171_v26 = vpop.f32.mrb[25].mxu1  ;;  %v1124_v24 = vmax.f32 %v679_v59, %v1060_v17  ;;  %v717_v43 = vadd.f32 %v2095_v1, %v1978_v31 }
 0x18c   :  { %v1327_v54 = vrot.slane %v1326_v13, 4  ;;  %v1334_v0 = vsel %vm1241_vm1, %v1206_v21, 0.0  ;;  %v2176_v45 = vpop.f32.mrb[26].mxu1  ;;  %v1122_v44 = vmax.f32 %v671_v10, %v1058_v3  ;;  %v1063_v16 = vmul.f32 0.01, %v725_v47 }
 0x18d   :  { %v1335_v49 = vadd.f32 %v1334_v0, %v1333_v62  ;;  %v1349_v50 = vsel %vm1241_vm1, %v1211_v38, 0.0  ;;  %v1346_v40 = vsel %vm1241_vm1, %v1209_v28, 0.0  ;;  %v2180_v7 = vpop.f32.mrb[27].mxu1  ;;  %v1212_v8 = vmul.f32 %v1996_v55, %v1124_v24 }
 0x18e   :  { %v2182_v58 = vadd.f32 %v1327_v54, %v1326_v13  ;;  %v1061_v21 = vmul.f32 0.01, %v717_v43  ;;  %v2185_v59 = vpop.f32.mrb[28].mxu0  ;;  %v1210_v1 = vmul.f32 %v1986_v36, %v1122_v44  ;;  %v728_v62 = vadd.f32 %v2098_v15, %v1982_v33 }
 0x18f   :  { %v1337_v17 = vadd.f32 %v1336_v37, %v1335_v49  ;;  %v720_v38 = vadd.f32 %v2102_v22, %v1976_v30  ;;  %v2192_v10 = vpop.f32.mrb[29].mxu0  ;;  %v1351_v13 = vsel %vm1241_vm1, %v1212_v8, 0.0  ;;  %v1127_v28 = vmax.f32 %v725_v47, %v1063_v16 }
 0x190   :  { %v1125_v3 = vmax.f32 %v717_v43, %v1061_v21  ;;  %v774_v54 = vadd.f32 %v2107_v25, %v1980_v32  ;;  %v2197_v0 = vpop.f32.mrb[30].mxu0  ;;  %v1347_v24 = vsel %vm1241_vm1, %v1210_v1, 0.0  ;;  %v1064_v49 = vmul.f32 0.01, %v728_v62 }
 0x191   :  { %v2199_v37 = vadd.f32 %v1338_v35, %v1337_v17  ;;  %v1062_v15 = vmul.f32 0.01, %v720_v38  ;;  %v2202_v44 = vpop.f32.mrb[31].mxu0  ;;  %v1348_v22 = vadd.f32 %v1347_v24, %v1346_v40  ;;  %v1215_v42 = vmul.f32 %v1992_v46, %v1127_v28 }
 0x192   :  { %v1213_v8 = vmul.f32 %v1984_v34, %v1125_v3  ;;  %v1067_v16 = vmul.f32 0.01, %v774_v54  ;;  %v2206_v47 = vpop.f32.mrb[28].mxu1  ;;  %v1128_v43 = vmax.f32 %v728_v62, %v1064_v49  ;;  %v766_v35 = vadd.f32 %v2110_v39, %v1978_v31 }
 0x193   :  { %2447 = vst [vmem:[#allocation8_spill] sm:$0xff] %v2199_v37  ;;  %v1126_v21 = vmax.f32 %v720_v38, %v1062_v15  ;;  %v2211_v17 = vpop.f32.mrb[29].mxu1  ;;  %v1350_v1 = vadd.f32 %v1349_v50, %v1348_v22  ;;  %v1362_v5 = vsel %vm1241_vm1, %v1215_v42, 0.0  ;;  %v777_v62 = vadd.f32 %v2114_v48, %v1982_v33 }
 0x194   :  { %v1359_v40 = vsel %vm1241_vm1, %v1213_v8, 0.0  ;;  %v1131_v28 = vmax.f32 %v774_v54, %v1067_v16  ;;  %v2215_v24 = vpop.f32.mrb[30].mxu1  ;;  %v1216_v3 = vmul.f32 %v1996_v55, %v1128_v43  ;;  %v1065_v25 = vmul.f32 0.01, %v766_v35 }
 0x195   :  { %v1214_v56 = vmul.f32 %v1986_v36, %v1126_v21  ;;  %v2221_v38 = vpop.f32.mrb[31].mxu1  ;;  %v1352_v39 = vadd.f32 %v1351_v13, %v1350_v1  ;;  %v769_v42 = vadd.f32 %v2119_v52, %v1976_v30  ;;  %v823_v54 = vadd.f32 %v2126_v2, %v1980_v32 }
 0x196   :  { %v1219_v50 = vmul.f32 %v1992_v46, %v1131_v28  ;;  %v1364_v49 = vsel %vm1241_vm1, %v1216_v3, 0.0  ;;  %v1129_v22 = vmax.f32 %v766_v35, %v1065_v25  ;;  %v1068_v8 = vmul.f32 0.01, %v777_v62 }
 0x197   :  { %v1360_v15 = vsel %vm1241_vm1, %v1214_v56, 0.0  ;;  %v1353_v16 = vrot.slane %v1352_v39, 4  ;;  %v1066_v21 = vmul.f32 0.01, %v769_v42  ;;  %v1071_v28 = vmul.f32 0.01, %v823_v54 }
 0x198   :  { %v1361_v43 = vadd.f32 %v1360_v15, %v1359_v40  ;;  %v1375_v48 = vsel %vm1241_vm1, %v1219_v50, 0.0  ;;  %v1217_v13 = vmul.f32 %v1984_v34, %v1129_v22  ;;  %v1132_v1 = vmax.f32 %v777_v62, %v1068_v8 }
 0x199   :  { %v815_v52 = vadd.f32 %v2130_v12, %v1978_v31  ;;  %v1354_v63 = vadd.f32 %v1353_v16, %v1352_v39  ;;  %v1130_v37 = vmax.f32 %v769_v42, %v1066_v21  ;;  %v826_v56 = vadd.f32 %v2137_v18, %v1982_v33 }
 0x19a   :  { %v1363_v2 = vadd.f32 %v1362_v5, %v1361_v43  ;;  %v1372_v25 = vsel %vm1241_vm1, %v1217_v13, 0.0  ;;  %v1220_v35 = vmul.f32 %v1996_v55, %v1132_v1  ;;  %v1135_v40 = vmax.f32 %v823_v54, %v1071_v28 }
 0x19b   :  { %v1069_v3 = vmul.f32 0.01, %v815_v52  ;;  %v1355_v50 = vrot.slane %v1354_v63, 2  ;;  %v1218_v62 = vmul.f32 %v1986_v36, %v1130_v37  ;;  %v1072_v22 = vmul.f32 0.01, %v826_v56 }
 0x19c   :  { %v1365_v15 = vadd.f32 %v1364_v49, %v1363_v2  ;;  %v1377_v8 = vsel %vm1241_vm1, %v1220_v35, 0.0  ;;  %v1223_v12 = vmul.f32 %v1992_v46, %v1135_v40  ;;  %v818_v39 = vadd.f32 %v2144_v27, %v1976_v30 }
 0x19d   :  { %v1133_v5 = vmax.f32 %v815_v52, %v1069_v3  ;;  %v1356_v18 = vadd.f32 %v1355_v50, %v1354_v63  ;;  %v1373_v16 = vsel %vm1241_vm1, %v1218_v62, 0.0  ;;  %v1136_v43 = vmax.f32 %v826_v56, %v1072_v22 }
 0x19e   :  { %v1366_v42 = vrot.slane %v1365_v15, 4  ;;  %v1374_v54 = vadd.f32 %v1373_v16, %v1372_v25  ;;  %v1388_v21 = vsel %vm1241_vm1, %v1223_v12, 0.0  ;;  %v1070_v37 = vmul.f32 0.01, %v818_v39 }
 0x19f   :  { %v1221_v49 = vmul.f32 %v1984_v34, %v1133_v5  ;;  %v1357_v13 = vrot.slane %v1356_v18, 1  ;;  %v1224_v28 = vmul.f32 %v1996_v55, %v1136_v43  ;;  %v872_v52 = vadd.f32 %v2147_v60, %v1980_v32 }
 0x1a0   :  { %v1367_v1 = vadd.f32 %v1366_v42, %v1365_v15  ;;  %v1376_v2 = vadd.f32 %v1375_v48, %v1374_v54  ;;  %v1134_v27 = vmax.f32 %v818_v39, %v1070_v37  ;;  %v864_v56 = vadd.f32 %v2151_v6, %v1978_v31 }
 0x1a1   :  { %v1385_v63 = vsel %vm1241_vm1, %v1221_v49, 0.0  ;;  %v2252_v25 = vadd.f32 %v1357_v13, %v1356_v18  ;;  %v1390_v40 = vsel %vm1241_vm1, %v1224_v28, 0.0  ;;  %v1075_v3 = vmul.f32 0.01, %v872_v52 }
 0x1a2   :  { %v1368_v35 = vrot.slane %v1367_v1, 2  ;;  %v1378_v50 = vadd.f32 %v1377_v8, %v1376_v2  ;;  %v1222_v15 = vmul.f32 %v1986_v36, %v1134_v27  ;;  %v1073_v62 = vmul.f32 0.01, %v864_v56 }
 0x1a3   :  { %v875_v60 = vadd.f32 %v2156_v41, %v1982_v33  ;;  %v2259_v48 = vadd.f32 -1e+08, %v2252_v25  ;;  %v1139_v12 = vmax.f32 %v872_v52, %v1075_v3  ;;  %v867_v6 = vadd.f32 %v2161_v11, %v1976_v30 }
 0x1a4   :  { %v1369_v22 = vadd.f32 %v1368_v35, %v1367_v1  ;;  %v1379_v5 = vrot.slane %v1378_v50, 4  ;;  %v1386_v39 = vsel %vm1241_vm1, %v1222_v15, 0.0  ;;  %v1137_v18 = vmax.f32 %v864_v56, %v1073_v62 }
 0x1a5   :  { %v1076_v42 = vmul.f32 0.01, %v875_v60  ;;  %v1387_v16 = vadd.f32 %v1386_v39, %v1385_v63  ;;  %v1227_v43 = vmul.f32 %v1992_v46, %v1139_v12  ;;  %v1074_v54 = vmul.f32 0.01, %v867_v6 }
 0x1a6   :  { %v1370_v8 = vrot.slane %v1369_v22, 1  ;;  %v1380_v49 = vadd.f32 %v1379_v5, %v1378_v50  ;;  %v1225_v41 = vmul.f32 %v1984_v34, %v1137_v18  ;;  %v921_v13 = vadd.f32 %v2165_v53, %v1980_v32 }
 0x1a7   :  { %v1140_v37 = vmax.f32 %v875_v60, %v1076_v42  ;;  %v1389_v11 = vadd.f32 %v1388_v21, %v1387_v16  ;;  %v1401_v28 = vsel %vm1241_vm1, %v1227_v43, 0.0  ;;  %v1138_v52 = vmax.f32 %v867_v6, %v1074_v54 }
 0x1a8   :  { %v2268_v1 = vadd.f32 %v1370_v8, %v1369_v22  ;;  %v1381_v2 = vrot.slane %v1380_v49, 2  ;;  %v1398_v27 = vsel %vm1241_vm1, %v1225_v41, 0.0  ;;  %v1079_v56 = vmul.f32 0.01, %v921_v13 }
 0x1a9   :  { %v1228_v63 = vmul.f32 %v1996_v55, %v1140_v37  ;;  %v1391_v3 = vadd.f32 %v1390_v40, %v1389_v11  ;;  %v1226_v50 = vmul.f32 %v1986_v36, %v1138_v52  ;;  %v913_v53 = vadd.f32 %v2171_v26, %v1978_v31 }
 0x1aa   :  { %v2274_v35 = vadd.f32 -1e+08, %v2268_v1  ;;  %v1382_v15 = vadd.f32 %v1381_v2, %v1380_v49  ;;  %v1143_v62 = vmax.f32 %v921_v13, %v1079_v56  ;;  %v924_v60 = vadd.f32 %v2176_v45, %v1982_v33 }
 0x1ab   :  { %v1403_v21 = vsel %vm1241_vm1, %v1228_v63, 0.0  ;;  %v1392_v22 = vrot.slane %v1391_v3, 4  ;;  %v1399_v12 = vsel %vm1241_vm1, %v1226_v50, 0.0  ;;  %v1077_v6 = vmul.f32 0.01, %v913_v53 }
 0x1ac   :  { %v916_v5 = vadd.f32 %v2180_v7, %v1976_v30  ;;  %v1383_v40 = vrot.slane %v1382_v15, 1  ;;  %v1400_v39 = vadd.f32 %v1399_v12, %v1398_v27  ;;  %v1231_v18 = vmul.f32 %v1992_v46, %v1143_v62 }
 0x1ad   :  { %v1080_v42 = vmul.f32 0.01, %v924_v60  ;;  %v1393_v26 = vadd.f32 %v1392_v22, %v1391_v3  ;;  %v1141_v8 = vmax.f32 %v913_v53, %v1077_v6  ;;  %v970_v43 = vadd.f32 %v2185_v59, %v1980_v32 }
 0x1ae   :  { %v1078_v16 = vmul.f32 0.01, %v916_v5  ;;  %v2288_v54 = vadd.f32 %v1383_v40, %v1382_v15  ;;  %v1402_v45 = vadd.f32 %v1401_v28, %v1400_v39  ;;  %v1414_v49 = vsel %vm1241_vm1, %v1231_v18, 0.0 }
 0x1af   :  { %v1144_v41 = vmax.f32 %v924_v60, %v1080_v42  ;;  %v1394_v37 = vrot.slane %v1393_v26, 2  ;;  %v1229_v7 = vmul.f32 %v1984_v34, %v1141_v8  ;;  %v1083_v11 = vmul.f32 0.01, %v970_v43 }
 0x1b0   :  { %v1142_v13 = vmax.f32 %v916_v5, %v1078_v16  ;;  %v1404_v52 = vadd.f32 %v1403_v21, %v1402_v45  ;;  %v962_v27 = vadd.f32 %v2192_v10, %v1978_v31  ;;  %v973_v59 = vadd.f32 %v2197_v0, %v1982_v33 }
 0x1b1   :  { %v1232_v2 = vmul.f32 %v1996_v55, %v1144_v41  ;;  %v2297_v63 = vadd.f32 %v1394_v37, %v1393_v26  ;;  %v1411_v28 = vsel %vm1241_vm1, %v1229_v7, 0.0  ;;  %v1147_v3 = vmax.f32 %v970_v43, %v1083_v11 }
 0x1b2   :  { %v1230_v56 = vmul.f32 %v1986_v36, %v1142_v13  ;;  %v1405_v50 = vrot.slane %v1404_v52, 4  ;;  %v1081_v15 = vmul.f32 0.01, %v962_v27  ;;  %v1084_v21 = vmul.f32 0.01, %v973_v59 }
 0x1b3   :  { %v1416_v53 = vsel %vm1241_vm1, %v1232_v2, 0.0  ;;  %v1396_v62 = vrot.slane %v2297_v63, 1  ;;  %v1235_v10 = vmul.f32 %v1992_v46, %v1147_v3  ;;  %v965_v0 = vadd.f32 %v2202_v44, %v1976_v30 }
 0x1b4   :  { %v1412_v60 = vsel %vm1241_vm1, %v1230_v56, 0.0  ;;  %v1406_v22 = vadd.f32 %v1405_v50, %v1404_v52  ;;  %v1145_v6 = vmax.f32 %v962_v27, %v1081_v15  ;;  %v1148_v5 = vmax.f32 %v973_v59, %v1084_v21 }
 0x1b5   :  { %v1413_v12 = vadd.f32 %v1412_v60, %v1411_v28  ;;  %v1427_v40 = vsel %vm1241_vm1, %v1235_v10, 0.0  ;;  %v1082_v39 = vmul.f32 0.01, %v965_v0  ;;  %v1019_v18 = vadd.f32 %v2206_v47, %v1980_v32 }
 0x1b6   :  { %v1011_v42 = vadd.f32 %v2211_v17, %v1978_v31  ;;  %v1407_v26 = vrot.slane %v1406_v22, 2  ;;  %v1233_v16 = vmul.f32 %v1984_v34, %v1145_v6  ;;  %v1236_v43 = vmul.f32 %v1996_v55, %v1148_v5 }
 0x1b7   :  { %v1415_v8 = vadd.f32 %v1414_v49, %v1413_v12  ;;  %v1146_v44 = vmax.f32 %v965_v0, %v1082_v39  ;;  %v1087_v45 = vmul.f32 0.01, %v1019_v18  ;;  %v1022_v37 = vadd.f32 %v2215_v24, %v1982_v33 }
 0x1b8   :  { %v1085_v41 = vmul.f32 0.01, %v1011_v42  ;;  %v2316_v7 = vadd.f32 %v1407_v26, %v1406_v22  ;;  %v1424_v32 = vsel %vm1241_vm1, %v1233_v16, 0.0  ;;  %v1429_v47 = vsel %vm1241_vm1, %v1236_v43, 0.0 }
 0x1b9   :  { %v1417_v13 = vadd.f32 %v1416_v53, %v1415_v8  ;;  %v1234_v31 = vmul.f32 %v1986_v36, %v1146_v44  ;;  %v1151_v17 = vmax.f32 %v1019_v18, %v1087_v45  ;;  %v1088_v11 = vmul.f32 0.01, %v1022_v37 }
 0x1ba   :  { %v1149_v49 = vmax.f32 %v1011_v42, %v1085_v41  ;;  %v1014_v2 = vadd.f32 %v2221_v38, %v1976_v30  ;;  %v1242_v27 = vsel %vm1241_vm1, %v2007_v4, 0.0  ;;  %v1243_v33 = vsel %vm1241_vm1, %v2015_v14, 0.0 }
 0x1bb   :  { %v1418_v52 = vrot.slane %v1417_v13, 4  ;;  %v1425_v24 = vsel %vm1241_vm1, %v1234_v31, 0.0  ;;  %v1239_v59 = vmul.f32 %v1992_v46, %v1151_v17  ;;  %v1152_v56 = vmax.f32 %v1022_v37, %v1088_v11  ;;  %v2450_v37 = vld [vmem:[#allocation8_spill] sm:$0xff]  ;;  %v2452_v17 = vld [vmem:[#allocation7_spill] sm:$0xff] }
 0x1bc   :  { %v1237_v28 = vmul.f32 %v1984_v34, %v1149_v49  ;;  %v1426_v50 = vadd.f32 %v1425_v24, %v1424_v32  ;;  %v1086_v53 = vmul.f32 0.01, %v1014_v2  ;;  %v1244_v15 = vadd.f32 %v1243_v33, %v1242_v27 }
 0x1bd   :  { %v1419_v3 = vadd.f32 %v1418_v52, %v1417_v13  ;;  %v1440_v21 = vsel %vm1241_vm1, %v1239_v59, 0.0  ;;  %v1240_v4 = vmul.f32 %v1996_v55, %v1152_v56  ;;  %v1245_v14 = vsel %vm1241_vm1, %v2003_v61, 0.0 }
 0x1be   :  { %v1437_v30 = vsel %vm1241_vm1, %v1237_v28, 0.0  ;;  %v1428_v60 = vadd.f32 %v1427_v40, %v1426_v50  ;;  %v1150_v10 = vmax.f32 %v1014_v2, %v1086_v53  ;;  %v1246_v46 = vadd.f32 %v1245_v14, %v1244_v15 }
 0x1bf   :  { %v1420_v38 = vrot.slane %v1419_v3, 2  ;;  %v1442_v34 = vsel %vm1241_vm1, %v1240_v4, 0.0  ;;  %v1247_v0 = vsel %vm1241_vm1, %v2011_v9, 0.0  ;;  %v1258_v22 = vsel %vm1241_vm1, %v2019_v19, 0.0 }
 0x1c0   :  { %v1260_v12 = vsel %vm1241_vm1, %v2025_v29, 0.0  ;;  %v1430_v6 = vadd.f32 %v1429_v47, %v1428_v60  ;;  %v1238_v55 = vmul.f32 %v1986_v36, %v1150_v10  ;;  %v1248_v5 = vadd.f32 %v1247_v0, %v1246_v46 }
 0x1c1   :  { %v1259_v61 = vadd.f32 %v1258_v22, %v2034_v51  ;;  %v2448_v40 = vrot.slane %v2104_v23, 1  ;;  %v1305_v18 = vrot.slane %v2121_v57, 1  ;;  %v2449_v9 = vrot.slane %v2139_v20, 2 }
 0x1c2   :  { %v1329_v42 = vrot.slane %v2182_v58, 2  ;;  %v1431_v29 = vrot.slane %v1430_v6, 4  ;;  %v1438_v26 = vsel %vm1241_vm1, %v1238_v55, 0.0  ;;  %v1249_v36 = vrot.slane %v1248_v5, 4 }
 0x1c3   :  { %v2347_v39 = vadd.f32 %v2448_v40, %v2104_v23  ;;  %v1317_v19 = vadd.f32 %v2449_v9, %v2139_v20  ;;  %v1261_v8 = vadd.f32 %v1260_v12, %v1259_v61  ;;  %v1439_v16 = vadd.f32 %v1438_v26, %v1437_v30 }
 0x1c4   :  { %v2356_v51 = vadd.f32 %v1305_v18, %v2121_v57  ;;  %v1330_v23 = vadd.f32 %v1329_v42, %v2182_v58  ;;  %v1432_v44 = vadd.f32 %v1431_v29, %v1430_v6  ;;  %v1250_v45 = vadd.f32 %v1249_v36, %v1248_v5 }
 0x1c5   :  { %v1318_v43 = vrot.slane %v1317_v19, 1  ;;  %v1262_v41 = vrot.slane %v1261_v8, 4  ;;  %v2451_v20 = vrot.slane %v2450_v37, 4  ;;  %v1441_v32 = vadd.f32 %v1440_v21, %v1439_v16 }
 0x1c6   :  { %v1331_v31 = vrot.slane %v1330_v23, 1  ;;  %v1625_v49 = vadd.f32 -1e+08, %v2452_v17  ;;  %v1251_v11 = vrot.slane %v1250_v45, 2  ;;  %v1626_v2 = vadd.f32 -1e+08, %v2347_v39 }
 0x1c7   :  { %v1341_v13 = vadd.f32 %v2451_v20, %v2450_v37  ;;  %v2362_v47 = vadd.f32 %v1318_v43, %v1317_v19  ;;  %v1263_v57 = vadd.f32 %v1262_v41, %v1261_v8  ;;  %v1443_v58 = vadd.f32 %v1442_v34, %v1441_v32 }
 0x1c8   :  { %v1332_v27 = vadd.f32 %v1331_v31, %v1330_v23  ;;  %v1627_v33 = vadd.f32 -1e+08, %v2356_v51  ;;  %v1252_v59 = vadd.f32 %v1251_v11, %v1250_v45  ;;  %v1397_v50 = vadd.f32 %v1396_v62, %v2297_v63 }
 0x1c9   :  { %v1342_v52 = vrot.slane %v1341_v13, 2  ;;  %v2368_v24 = vadd.f32 -1e+08, %v2362_v47  ;;  %v1264_v28 = vrot.slane %v1263_v57, 2  ;;  %v1444_v53 = vrot.slane %v1443_v58, 4 }
 0x1ca   :  { %v1629_v15 = vadd.f32 -1e+08, %v1332_v27  ;;  %v1409_v21 = vrot.slane %v2316_v7, 1  ;;  %v1421_v30 = vadd.f32 %v1420_v38, %v1419_v3  ;;  %v1253_v4 = vrot.slane %v1252_v59, 1 }
 0x1cb   :  { %v1343_v56 = vadd.f32 %v1342_v52, %v1341_v13  ;;  %v1265_v14 = vadd.f32 %v1264_v28, %v1263_v57  ;;  %v1433_v10 = vrot.slane %v1432_v44, 2  ;;  %v1445_v0 = vadd.f32 %v1444_v53, %v1443_v58  ;;  %v2454_v52 = vld [vmem:[#allocation5_spill] sm:$0xff] }
 0x1cc   :  { %v1410_v46 = vadd.f32 %v1409_v21, %v2316_v7  ;;  %v1422_v34 = vrot.slane %v1421_v30, 1  ;;  %v1633_v22 = vadd.f32 -1e+08, %v2288_v54  ;;  %v1254_v12 = vadd.f32 %v1253_v4, %v1252_v59 }
 0x1cd   :  { %v1344_v60 = vrot.slane %v1343_v56, 1  ;;  %v1266_v63 = vrot.slane %v1265_v14, 1  ;;  %v1434_v6 = vadd.f32 %v1433_v10, %v1432_v44  ;;  %v1446_v5 = vrot.slane %v1445_v0, 2 }
 0x1ce   :  { %v1423_v55 = vadd.f32 %v1422_v34, %v1421_v30  ;;  %v1634_v61 = vadd.f32 -1e+08, %v1397_v50  ;;  %v1635_v3 = vadd.f32 -1e+08, %v1410_v46  ;;  %v1623_v40 = vadd.f32 -1e+08, %v1254_v12 }
 0x1cf   :  { %v1345_v62 = vadd.f32 %v1344_v60, %v1343_v56  ;;  %v1267_v38 = vadd.f32 %v1266_v63, %v1265_v14  ;;  %v1435_v9 = vrot.slane %v1434_v6, 1  ;;  %v1447_v19 = vadd.f32 %v1446_v5, %v1445_v0 }
 0x1d0   :  { %v1636_v42 = vadd.f32 -1e+08, %v1423_v55  ;;  %v1504_v7 = vsel %vm1490_vm2, %v2274_v35, %v2259_v48  ;;  %v1536_v29 = vsel %vm1490_vm2, %v2268_v1, %v2252_v25 }
 0x1d1   :  { %v1630_v18 = vadd.f32 -1e+08, %v1345_v62  ;;  %v1624_v26 = vadd.f32 -1e+08, %v1267_v38  ;;  %v1529_v36 = vsel %vm1490_vm2, %v1267_v38, %v1254_v12  ;;  %v1436_v8 = vadd.f32 %v1435_v9, %v1434_v6 }
 0x1d2   :  { %v1505_v16 = vsel %vm1492_vm3, %v1633_v22, %v1504_v7  ;;  %v1530_v43 = vsel %vm1492_vm3, %v2452_v17, %v1529_v36  ;;  %v1448_v23 = vrot.slane %v1447_v19, 1  ;;  %v1537_v45 = vsel %vm1492_vm3, %v2288_v54, %v1536_v29 }
 0x1d3   :  { %v1506_v44 = vsel %vm1494_vm4, %v1634_v61, %v1505_v16  ;;  %v1491_v48 = vsel %vm1490_vm2, %v1624_v26, %v1623_v40  ;;  %v1531_v25 = vsel %vm1494_vm4, %v2347_v39, %v1530_v43  ;;  %v1637_v1 = vadd.f32 -1e+08, %v1436_v8 }
 0x1d4   :  { %v1507_v35 = vsel %vm1496_vm5, %v1635_v3, %v1506_v44  ;;  %v1493_v41 = vsel %vm1492_vm3, %v1625_v49, %v1491_v48  ;;  %v1532_v37 = vsel %vm1496_vm5, %v2356_v51, %v1531_v25  ;;  %v1449_v20 = vadd.f32 %v1448_v23, %v1447_v19  ;;  %v2453_v51 = vld [vmem:[#allocation6_spill] sm:$0xff] }
 0x1d5   :  { %v1508_v13 = vsel %vm1498_vm6, %v1636_v42, %v1507_v35  ;;  %v1495_v32 = vsel %vm1494_vm4, %v1626_v2, %v1493_v41  ;;  %v1533_v54 = vsel %vm1498_vm6, %v2362_v47, %v1532_v37  ;;  %v1538_v39 = vsel %vm1494_vm4, %v1397_v50, %v1537_v45 }
 0x1d6   :  { %v1509_v31 = vsel %vm1500_vm7, %v1637_v1, %v1508_v13  ;;  %v1497_v17 = vsel %vm1496_vm5, %v1627_v33, %v1495_v32  ;;  %v1534_v11 = vsel %vm1500_vm7, %v1332_v27, %v1533_v54  ;;  %v1638_v49 = vadd.f32 -1e+08, %v1449_v20 }
 0x1d7   :  { %v1539_v57 = vsel %vm1496_vm5, %v1410_v46, %v1538_v39  ;;  %vm1457_vm9 = vcmp.eq.s32.totalorder %v2454_v52, %v2453_v51  ;;  %v1499_v2 = vsel %vm1498_vm6, %v2368_v24, %v1497_v17  ;;  %v1535_v58 = vsel %vm1502_vm8, %v1345_v62, %v1534_v11 }
 0x1d8   :  { %v1540_v47 = vsel %vm1498_vm6, %v1423_v55, %v1539_v57  ;;  %v1501_v59 = vsel %vm1500_vm7, %v1629_v15, %v1499_v2  ;;  %v1510_v28 = vsel %vm1502_vm8, %v1638_v49, %v1509_v31 }
 0x1d9   :  { %v1541_v33 = vsel %vm1500_vm7, %v1436_v8, %v1540_v47  ;;  %v1503_v27 = vsel %vm1502_vm8, %v1630_v18, %v1501_v59 }
 0x1da   :  { %v1542_v56 = vsel %vm1502_vm8, %v1449_v20, %v1541_v33  ;;  %v1545_v50 = vsel %vm1457_vm9, %v1503_v27, %v1535_v58 }
 0x1db   :  { %v1546_v53 = vsel %vm1457_vm9, %v1510_v28, %v1542_v56  ;;  %v1547_v21 = vsel %vm1241_vm1, %v1545_v50, -inf }
 0x1dc   :  { %v1550_v24 = vsel %vm1241_vm1, %v1546_v53, -inf  ;;  %1548 = vmax.xlane.f32.xlu1 %v1547_v21 }
 0x1dd   :  { %1551 = vmax.xlane.f32.xlu0 %v1550_v24 }
 0x269   :  { %v1549_v30 = vpop.xlane.xlu1 %1548 }
 0x26a   :  { %v1552_v4 = vpop.xlane.xlu0 %1551  ;;  %v1553_v14 = vsub.f32 %v1545_v50, %v1549_v30 }
 0x26b   :  { %v1554_v15 = vsub.f32 %v1546_v53, %v1552_v4 }
 0x26c   :  { %v1555_v60 = vmul.f32 1.442695, %v1553_v14 }
 0x26d   :  { %v1557_v10 = vmul.f32 1.442695, %v1554_v15 }
 0x26e   :  { %1793 = vpow2.f32 %v1555_v60 }
 0x26f   :  { %1795 = vpow2.f32 %v1557_v10 }
 0x278   :  { %v1794_v46 = vpop.eup %1793 }
 0x279   :  { %v1796_v34 = vpop.eup %1795  ;;  %v1559_v0 = vsel %vm1241_vm1, %v1794_v46, 0.0 }
 0x27a   :  { %1560 = vadd.xlane.f32.xlu0 %v1559_v0  ;;  %v1562_v22 = vsel %vm1241_vm1, %v1796_v34, 0.0 }
 0x27b   :  { %1563 = vadd.xlane.f32.xlu1 %v1562_v22 }
 0x307   :  { %v1561_v12 = vpop.xlane.xlu0 %1560 }
 0x308   :  { %1797 = vrcp.f32 %v1561_v12  ;;  %v1564_v63 = vpop.xlane.xlu1 %1563 }
 0x309   :  { %1799 = vrcp.f32 %v1564_v63 }
 0x312   :  { %v1798_v62 = vpop.eup %1797 }
 0x313   :  { %v1800_v6 = vpop.eup %1799  ;;  %v1567_v55 = vmul.f32 %v1798_v62, %v1794_v46 }
 0x314   :  { %v1568_v5 = vmul.f32 %v1800_v6, %v1796_v34 }
 0x315   :  { %1569 = vst.msk [vmem:[#allocation2] sm:$0xff] %vm1241_vm1, %v1567_v55 }
 0x316   :  { %1570 = vst.msk [vmem:[#allocation2 + $0x8] sm:$0xff] %vm1241_vm1, %v1568_v5 }
 0x317   :  { %1812 = shalt.err (!%p1809_p4)
}
 0x318   :  { %s1813_s21 = scalar_lea.hbm %s2439_s5, 256 }
 0x319   :  { %p1814_p5 = scmp.ne.s32.totalorder %s2439_s5, %s1813_s21  ;;  %p1817_p6 = scmp.lt.u32.totalorder %s1813_s21, %s2439_s5 }
 0x31b   :  { %p1819_p7 = pnand %p1817_p6, %p1814_p5 }
 0x31d   :  { %1822 = shalt.err (!%p1819_p7)
}
 0x31e   :  { %s1827_s25 = smov 128   ;;  %s1828_s26 = smov 8  }
 0x31f   :  { %1582 = dma.vmem_to_hbm [thread:$0]  %s1577_s17, 256, %s2439_s5, [#allocation3], %s1827_s25, %s1827_s25, %s1828_s26  }
 0x320   :  { %1823 = dma.done.wait [#allocation3], 256  }
 0x321   :  { %1824 = vsyncadd [#allocation3], 4294967040 }
 0x322   :  { %1586 = vsyncpa [#allocation3], 1 }

</bundles_post_ra>
